<compile_context>
chip_gen: v7x
topology: tpu7x:2x2x1
jax: 0.10.0
libtpu: 0.0.40
codegen_flags: <defaults>
</compile_context>

<pallas_src>
import functools

import jax
import jax.numpy as jnp
import numpy as np
from jax.experimental import pallas as pl
from jax.experimental.pallas import tpu as pltpu

LN_EPS = 1e-5
_VMEM_DATA_BUDGET = 20 * 1024 * 1024   # per-step double-buffered footprint cap
_VMEM_LIMIT_BYTES = 32 * 1024 * 1024   # explicit scoped limit (fits v5e/v6e/v7x)


def _round_up(x, m):
    return (x + m - 1) // m * m


def prenorm_linear_kernel(x_ref, w_ref, b_ref, o_ref, *, m_total, tile_m, ragged):
    # x_ref: (tile_m, C) token tile; w_ref: (C, H) with LN affine folded in;
    # b_ref: (1, H) folded bias; o_ref: (tile_m, H).
    x = x_ref[...].astype(jnp.float32)

    if ragged:
        # Only the last tile can contain rows past M; zero them so stale VMEM
        # bytes can never produce NaN/Inf (their outputs are discarded by the
        # partial-block store anyway).
        row = (jax.lax.broadcasted_iota(jnp.int32, (x.shape[0], 1), 0)
               + pl.program_id(0) * tile_m)
        x = jnp.where(row < m_total, x, 0.0)

    # ---- LayerNorm, two-pass (tile already resident in VMEM -> free) ------
    mean = jnp.mean(x, axis=-1, keepdims=True)
    centered = x - mean
    var = jnp.mean(centered * centered, axis=-1, keepdims=True)
    xn = centered * jax.lax.rsqrt(var + LN_EPS)

    # ---- wrapped layer: Linear(C -> H) on the MXU, f32 accumulation -------
    y = jnp.dot(xn.astype(w_ref.dtype), w_ref[...],
                preferred_element_type=jnp.float32)
    o_ref[...] = (y + b_ref[...]).astype(o_ref.dtype)


def prenorm_linear(x, gamma, beta, w, b, *, tm=1024,
                   matmul_dtype=None, out_dtype=None):
    """PreNorm(LayerNorm(C) -> Linear(C, H)).  x: (B, N, C) -> (B, N, H)."""
    B, N, C = x.shape
    H = w.shape[1]
    M = B * N

    if matmul_dtype is None:
        # Follow parameter dtype (exact torch semantics for f32 params); pass
        # matmul_dtype=jnp.bfloat16 explicitly for ~3x MXU throughput on
        # v5e/v7x where f32 dots take multiple passes.
        matmul_dtype = w.dtype
    if out_dtype is None:
        out_dtype = x.dtype

    # ---- fold LayerNorm affine into the linear layer (once, trace time) ---
    w32 = w.astype(jnp.float32)
    w_f = (gamma.astype(jnp.float32)[:, None] * w32).astype(matmul_dtype)
    b_f = (beta.astype(jnp.float32) @ w32
           + b.astype(jnp.float32)).reshape(1, H).astype(jnp.float32)

    szx = jnp.dtype(x.dtype).itemsize
    szw = jnp.dtype(matmul_dtype).itemsize
    szo = jnp.dtype(out_dtype).itemsize

    # ---- row tile selection under an explicit VMEM budget -----------------
    def footprint(t):   # double-buffered per-step VMEM data bytes
        return 2 * t * C * szx + 2 * C * H * szw + 2 * H * 4 + 2 * t * H * szo

    tm = max(8, min(tm, _round_up(M, 8)))
    while tm > 8 and footprint(tm) > _VMEM_DATA_BUDGET:
        tm //= 2
    tm = _round_up(tm, 8)

    # Balanced tiles (<= 7 rows of pad) and >= 2 grid steps when there is
    # enough work, so v7x's two TensorCores both get a share.
    n_tiles = pl.cdiv(M, tm)
    if M >= 16:
        n_tiles = max(n_tiles, 2)
    tm_eff = _round_up(pl.cdiv(M, n_tiles), 8)
    grid_m = pl.cdiv(M, tm_eff)
    ragged = (M % tm_eff) != 0

    x2 = x.reshape(M, C)   # metadata-only

    kernel = functools.partial(prenorm_linear_kernel,
                               m_total=M, tile_m=tm_eff, ragged=ragged)

    cost = pl.CostEstimate(
        flops=2 * M * C * H + 8 * M * C,
        transcendentals=M,
        bytes_accessed=M * C * szx + C * H * szw + H * 4 + M * H * szo,
    )

    out = pl.pallas_call(
        kernel,
        out_shape=jax.ShapeDtypeStruct((M, H), out_dtype),
        grid_spec=pltpu.PrefetchScalarGridSpec(
            num_scalar_prefetch=0,
            grid=(grid_m,),
            in_specs=[
                pl.BlockSpec((tm_eff, C), lambda i: (i, 0)),  # token tile
                pl.BlockSpec((C, H), lambda i: (0, 0)),       # folded weight (grid-invariant)
                pl.BlockSpec((1, H), lambda i: (0, 0)),       # folded bias (grid-invariant)
            ],
            out_specs=pl.BlockSpec((tm_eff, H), lambda i: (i, 0)),
        ),
        compiler_params=pltpu.CompilerParams(
            dimension_semantics=("parallel",),
            vmem_limit_bytes=_VMEM_LIMIT_BYTES),
        cost_estimate=cost,
    )(x2, w_f, b_f)

    return out.reshape(B, N, H)   # metadata-only, no slice


def prenorm_linear_ref(x, gamma, beta, w, b):
    xf = x.astype(jnp.float32)
    mean = jnp.mean(xf, axis=-1, keepdims=True)
    var = jnp.mean((xf - mean) ** 2, axis=-1, keepdims=True)
    xn = (xf - mean) * jax.lax.rsqrt(var + LN_EPS)
    xn = xn * gamma.astype(jnp.float32) + beta.astype(jnp.float32)
    return (xn @ w.astype(jnp.float32) + b.astype(jnp.float32)).astype(x.dtype)


if __name__ == "__main__":
    key = jax.random.PRNGKey(0)
    kx, kw, kb, kg, kbe, kx2 = jax.random.split(key, 6)

    # MobileViT-ish small shapes: batch=2, tokens=8, channels=32, hidden=64.
    B, N, C, H = 2, 8, 32, 64
    x = jax.random.normal(kx, (B, N, C), dtype=jnp.float32)
    gamma = 1.0 + 0.1 * jax.random.normal(kg, (C,), dtype=jnp.float32)
    beta = 0.1 * jax.random.normal(kbe, (C,), dtype=jnp.float32)
    w = jax.random.normal(kw, (C, H), dtype=jnp.float32) * 0.05
    b = jax.random.normal(kb, (H,), dtype=jnp.float32) * 0.05

    # 1) exact f32 path (torch semantics), 2 even grid steps.
    out = jax.block_until_ready(prenorm_linear(x, gamma, beta, w, b))
    ref = prenorm_linear_ref(x, gamma, beta, w, b)
    np.testing.assert_allclose(np.asarray(out), np.asarray(ref),
                               rtol=1e-4, atol=1e-4)

    # 2) ragged M (M=21 -> two 16-row tiles, in-kernel row masking).
    x_r = jax.random.normal(kx2, (3, 7, C), dtype=jnp.float32)
    out_r = jax.block_until_ready(prenorm_linear(x_r, gamma, beta, w, b))
    ref_r = prenorm_linear_ref(x_r, gamma, beta, w, b)
    np.testing.assert_allclose(np.asarray(out_r), np.asarray(ref_r),
                               rtol=1e-4, atol=1e-4)

    # 3) bf16 MXU path (recommended on v5e/v7x); looser tolerance expected.
    out_bf = jax.block_until_ready(
        prenorm_linear(x, gamma, beta, w, b, matmul_dtype=jnp.bfloat16))
    np.testing.assert_allclose(np.asarray(out_bf), np.asarray(ref),
                               rtol=5e-2, atol=5e-2)

    print("KERNEL_OK")
</pallas_src>

<mosaic_0001>
module attributes {stable_mosaic.version = 11 : i64} {
  func.func @prenorm_linear_kernel(%arg0: i32, %arg1: memref<8x32xf32, #tpu.memory_space<vmem>>, %arg2: memref<32x64xf32, #tpu.memory_space<vmem>>, %arg3: memref<1x64xf32, #tpu.memory_space<vmem>>, %arg4: memref<8x64xf32, #tpu.memory_space<vmem>>) attributes {dimension_semantics = [#tpu.dimension_semantics<parallel>], iteration_bounds = array<i64: 2>, scalar_prefetch = 0 : i64, scratch_operands = 0 : i64, tpu.core_type = #tpu.core_type<tc>, window_params = [{transform_indices = @transform_0, window_bounds = array<i64: 8, 32>}, {pipeline_mode = #tpu.pipeline_mode<synchronous>, transform_indices = @transform_1, window_bounds = array<i64: 32, 64>}, {pipeline_mode = #tpu.pipeline_mode<synchronous>, transform_indices = @transform_2, window_bounds = array<i64: 1, 64>}, {transform_indices = @transform_3, window_bounds = array<i64: 8, 64>}]} {
    %c0 = arith.constant 0 : index
    %c0_0 = arith.constant 0 : index
    %0 = vector.load %arg1[%c0, %c0_0] : memref<8x32xf32, #tpu.memory_space<vmem>>, vector<8x32xf32>
    %cst = arith.constant dense<0.000000e+00> : vector<8xf32>
    %1 = vector.multi_reduction <add>, %0, %cst [1] : vector<8x32xf32> to vector<8xf32>
    %2 = vector.shape_cast %1 : vector<8xf32> to vector<8x1xf32>
    %cst_1 = arith.constant 3.200000e+01 : f32
    %3 = vector.broadcast %cst_1 : f32 to vector<8x1xf32>
    %4 = arith.divf %2, %3 : vector<8x1xf32>
    %5 = vector.broadcast %4 : vector<8x1xf32> to vector<8x32xf32>
    %6 = arith.subf %0, %5 : vector<8x32xf32>
    %7 = arith.mulf %6, %6 : vector<8x32xf32>
    %cst_2 = arith.constant dense<0.000000e+00> : vector<8xf32>
    %8 = vector.multi_reduction <add>, %7, %cst_2 [1] : vector<8x32xf32> to vector<8xf32>
    %9 = vector.shape_cast %8 : vector<8xf32> to vector<8x1xf32>
    %cst_3 = arith.constant 3.200000e+01 : f32
    %10 = vector.broadcast %cst_3 : f32 to vector<8x1xf32>
    %11 = arith.divf %9, %10 : vector<8x1xf32>
    %cst_4 = arith.constant 9.99999974E-6 : f32
    %12 = vector.broadcast %cst_4 : f32 to vector<8x1xf32>
    %13 = arith.addf %11, %12 : vector<8x1xf32>
    %14 = math.rsqrt %13 : vector<8x1xf32>
    %15 = vector.broadcast %14 : vector<8x1xf32> to vector<8x32xf32>
    %16 = arith.mulf %6, %15 : vector<8x32xf32>
    %c0_5 = arith.constant 0 : index
    %c0_6 = arith.constant 0 : index
    %17 = vector.load %arg2[%c0_5, %c0_6] : memref<32x64xf32, #tpu.memory_space<vmem>>, vector<32x64xf32>
    %cst_7 = arith.constant dense<0.000000e+00> : vector<8x64xf32>
    %18 = tpu.matmul %16, %17, %cst_7 {dimension_numbers = #tpu.dot_dimension_numbers<[1], [0], [0], [1], [0, 0, 1, 1], [], []>} : vector<8x32xf32>, vector<32x64xf32>, vector<8x64xf32> -> vector<8x64xf32>
    %c0_8 = arith.constant 0 : index
    %c0_9 = arith.constant 0 : index
    %19 = vector.load %arg3[%c0_8, %c0_9] : memref<1x64xf32, #tpu.memory_space<vmem>>, vector<1x64xf32>
    %20 = vector.broadcast %19 : vector<1x64xf32> to vector<8x64xf32>
    %21 = arith.addf %18, %20 : vector<8x64xf32>
    %c0_10 = arith.constant 0 : index
    %c0_11 = arith.constant 0 : index
    %22 = vector.load %arg4[%c0_10, %c0_11] : memref<8x64xf32, #tpu.memory_space<vmem>>, vector<8x64xf32>
    tpu.vector_store %arg4[%c0_10, %c0_11], %21 {strides = array<i32>} : memref<8x64xf32, #tpu.memory_space<vmem>>, vector<8x64xf32>,
    return
  }
  func.func @transform_0(%arg0: i32) -> (i32, i32) {
    %c0_i32 = arith.constant 0 : i32
    %c0_i32_0 = arith.constant 0 : i32
    return %arg0, %c0_i32 : i32, i32
  }
  func.func @transform_1(%arg0: i32) -> (i32, i32) {
    %c0_i32 = arith.constant 0 : i32
    %c0_i32_0 = arith.constant 0 : i32
    %c0_i32_1 = arith.constant 0 : i32
    return %c0_i32, %c0_i32_0 : i32, i32
  }
  func.func @transform_2(%arg0: i32) -> (i32, i32) {
    %c0_i32 = arith.constant 0 : i32
    %c0_i32_0 = arith.constant 0 : i32
    %c0_i32_1 = arith.constant 0 : i32
    return %c0_i32, %c0_i32_0 : i32, i32
  }
  func.func @transform_3(%arg0: i32) -> (i32, i32) {
    %c0_i32 = arith.constant 0 : i32
    %c0_i32_0 = arith.constant 0 : i32
    return %arg0, %c0_i32 : i32, i32
  }
}

</mosaic_0001>

<bundles_post_ra>
// kernel: tpu_custom_call.1
= control target key start
LH: loop header
LB: loop body
LE: loop exit
PB: predicated region body
PF: predicated region fallthrough
CT: control target
= control target key end

     0   :  { %8 = vsyncpa [#allocation3], 0  ;;  %s863_s0 = inlined_call_operand.hbm [shape: f32[16,32], index: 0, kind: input, shape index: {}]   ;;  %s864_s1 = inlined_call_operand.hbm [shape: f32[32,64], index: 1, kind: input, shape index: {}]   ;;  %s865_s2 = inlined_call_operand.vmem [shape: f32[1,64], index: 2, kind: input, shape index: {}]   ;;  %s866_s3 = inlined_call_operand.hbm [shape: f32[16,64], index: 3, kind: output, shape index: {}]  }
   0x1   :  { %10 = vsyncpa [#allocation3 + $0x1], 0 }
   0x2   :  { %11 = vsyncpa [#allocation6], 0 }
   0x3   :  { %12 = vsyncpa [#allocation4], 0 }
   0x4   :  { %14 = vsyncpa [#allocation4 + $0x1], 0  ;;  %s657_s12 = smov 0   ;;  %s659_s13 = smov 0  }
   0x5   :  { %s661_s14 = smov 0   ;;  %s663_s15 = smov 0  }
   0x6 LB: > { %s678_s16 = sadd.s32 4294967295, %s627_s15   ;;  %s397_s17 = sadd.s32 4294967294, %s627_s15   ;;  %s627_s15 = sphi %s663_s15, %s886_s15   ;;  %s623_s14 = sphi %s661_s14, %s885_s14   ;;  %s619_s13 = sphi %s659_s13, %s884_s13   ;;  %s615_s12 = sphi %s657_s12, %s883_s12  }
   0x7   : > { %p40_p0 = scmp.ne.s32.totalorder %s619_s13, %s615_s12  ;;  %p867_p1 = scmp.eq.s32.totalorder %s678_s16, 0 }
   0x8   : > { %p112_p3 = scmp.eq.s32.totalorder %s397_s17, 1  ;;  %p398_p5 = scmp.ge.s32.totalorder %s627_s15, 1 }
   0x9   : > { %p687_p4 = por %p867_p1, %p40_p0  ;;  %p119_p7 = scmp.lt.s32.totalorder %s627_s15, 3 }
   0xa   : > { %p692_p6 = por %p112_p3, %p40_p0  ;;  %s629_s21 = smov [#allocation5]  }
   0xb   : > { %s870_s18 = scalar_select %p687_p4, 1, 0 }
   0xc   : > { %s871_s19 = scalar_select %p692_p6, 1, 0 }
   0xd   : > { %p697_p8 = pnand %p398_p5, %p119_p7  ;;  %s131_s22 = sshll.u32 %s629_s21, 4  ;;  %s701_s22 = int_to_ptr.vmem [resolvable:$true] %s131_s22 }
   0xe   : > { %s713_s24 = sadd.s32 1, %s627_s15   ;;  %s27_s25 = sadd.s32 1, %s623_s14 }
   0xf   : > { %s872_s20 = scalar_select %p697_p8, 1, 0 }
  0x10   : > { %p443_p9 = pneg %p697_p8  ;;  %s24_s26 = ssub.s32 %s627_s15, %s713_s24 }
  0x11   : > { %s499_s29 = scalar_lea.hbm %s864_s1, 512 }
  0x12   : > { %p708_p11 = pnand %p443_p9, %p867_p1  ;;  %p500_p12 = scmp.ne.s32.totalorder %s864_s1, %s499_s29 }
  0x13   : > { %p506_p5 = scmp.lt.u32.totalorder %s499_s29, %s864_s1 }
  0x14   : > { %p501_p13 = pneg %p708_p11 }
  0x16   : > { %p502_p0 = pnand %p501_p13, %p500_p12 }
  0x18   : > { %p503_p3 = pneg %p502_p0 }
  0x1a   : > { %p508_p7 = pnand %p506_p5, %p503_p3 }
  0x1c   : > { %511 = shalt.err (!%p508_p7)
}
  0x1d   : > { %s512_s7 = scalar_lea.vmem %s701_s22, 512  ;;  %p520_p2 = scmp.lt.s32.totalorder %s701_s22, %s701_s22 }
  0x1e   : > { %p513_p9 = scmp.ne.s32.totalorder %s701_s22, %s512_s7  ;;  %p521_p6 = scmp.lt.s32.totalorder %s512_s7, %s512_s7 }
  0x20   : > { %p515_p10 = pnand %p513_p9, %p501_p13  ;;  %p522_p4 = por %p521_p6, %p520_p2 }
  0x22   : > { %p516_p1 = pneg %p515_p10 }
  0x24   : > { %p523_p8 = pnand %p522_p4, %p516_p1 }
  0x26   : > { %526 = shalt.err (!%p523_p8)
}
  0x27   : > { %s630_s8 = smov 128   ;;  %s631_s9 = smov 8  }
  0x28   : > { %446 = dma.hbm_to_vmem [thread:$0]  (!%p708_p11), %s864_s1, 512, %s701_s22, [#allocation6], %s630_s8, %s630_s8, %s631_s9  }
  0x29   : > { %p25_p2 = scmp.eq.s32.totalorder %s24_s26, 0  ;;  %p34_p1 = scmp.ne.s32.totalorder %s623_s14, %s619_s13 }
  0x2a   : > { %p35_p4 = scmp.eq.s32.totalorder %s627_s15, 0  ;;  %p456_p6 = scmp.lt.s32.totalorder %s627_s15, 2 }
  0x2b   : > { %s744_s17 = scalar_select %p25_p2, %s623_s14, %s27_s25  }
  0x2c   : > { %p36_p8 = por %p35_p4, %p34_p1  ;;  %p874_p10 = scmp.eq.s32.totalorder %s678_s16, 1 }
  0x2d   : > { %s148_s27 = sand.u32 1, %s623_s14   ;;  %s402_s28 = sshll.u32 %s627_s15, 7 }
  0x2e   : > { %p748_p12 = por %p874_p10, %p34_p1  ;;  %s401_s29 = sshll.u32 %s148_s27, 3 }
  0x2f   : > { %s757_s4 = scalar_lea.hbm %s863_s0, %s402_s28  ;;  %s152_s22 = scalar_lea.vmem [#allocation2], %s401_s29 }
  0x30   : > { %s159_s25 = sshll.u32 %s152_s22, 4  ;;  %p759_p11 = pnand %p456_p6, %p36_p8  ;;  %s763_s25 = int_to_ptr.vmem [resolvable:$true] %s159_s25 }
  0x31   : > { %s149_s5 = scalar_lea.sflag [#allocation3], %s148_s27  ;;  %s527_s6 = scalar_lea.hbm %s757_s4, 128 }
  0x32   : > { %p528_p13 = scmp.ne.s32.totalorder %s757_s4, %s527_s6  ;;  %p529_p0 = pneg %p759_p11 }
  0x33   : > { %s532_s9 = scalar_lea.hbm %s863_s0, 256  ;;  %p533_p7 = scmp.lt.u32.totalorder %s757_s4, %s863_s0 }
  0x34   : > { %p530_p3 = pnand %p529_p0, %p528_p13  ;;  %p534_p9 = scmp.lt.u32.totalorder %s532_s9, %s527_s6 }
  0x35   : > { %p536_p1 = scmp.lt.u32.totalorder %s527_s6, %s757_s4 }
  0x36   : > { %p531_p5 = pneg %p530_p3  ;;  %p535_p2 = por %p534_p9, %p533_p7 }
  0x38   : > { %p537_p4 = por %p536_p1, %p535_p2 }
  0x3a   : > { %p538_p6 = pnand %p537_p4, %p531_p5 }
  0x3c   : > { %541 = shalt.err (!%p538_p6)
}
  0x3d   : > { %s542_s27 = scalar_lea.vmem %s763_s25, 128  ;;  %s632_s28 = smov [#allocation2]  }
  0x3e   : > { %p543_p8 = scmp.ne.s32.totalorder %s763_s25, %s542_s27  ;;  %s547_s29 = sshll.u32 %s632_s28, 4  ;;  %s548_s29 = int_to_ptr.vmem [resolvable:$false] %s547_s29 }
  0x3f   : > { %s549_s23 = scalar_lea.vmem %s548_s29, 256  ;;  %p550_p3 = scmp.lt.s32.totalorder %s763_s25, %s548_s29 }
  0x40   : > { %p545_p10 = pnand %p543_p8, %p529_p0  ;;  %p551_p7 = scmp.lt.s32.totalorder %s549_s23, %s542_s27 }
  0x42   : > { %p546_p13 = pneg %p545_p10  ;;  %p552_p9 = por %p551_p7, %p550_p3 }
  0x44   : > { %p553_p2 = pnand %p552_p9, %p546_p13 }
  0x46   : > { %556 = shalt.err (!%p553_p2)
}
  0x47   : > { %450 = dma.hbm_to_vmem [thread:$0]  (!%p759_p11), %s757_s4, 128, %s763_s25, %s149_s5  }
  0x48   : > { %p877_p5 = scmp.ne.s32.totalorder %s872_s20, 0 }
  0x49   : > { %s793_s30 = sand.u32 (!%p877_p5), 1, %s619_s13   ;;  %p878_p0 = scmp.ne.s32.totalorder (!%p877_p5), %s870_s18, 0 }
  0x4a   : > { %168 = sbr.rel (%p877_p5) target bundleno = 623 (0x26f), region = 32  ;;  %s404_s22 = sshll.u32 (!%p877_p5), %s793_s30, 3 }
  0x4b   : > { %s171_s6 = scalar_lea.sflag (!%p877_p5), [#allocation3], %s793_s30  ;;  %s174_s7 = scalar_lea.vmem (!%p877_p5), [#allocation2], %s404_s22 }
  0x51   : > { %602 = dma.done.wait (%p878_p0), %s171_s6, 128  }
  0x52   : > { %604 = vsyncadd (%p878_p0), %s171_s6, 4294967168  ;;  %p879_p11 = scmp.eq.s32.totalorder %s678_s16, 0 }
  0x54   : > { %606 = dma.done.wait (%p879_p11), [#allocation6], 512   ;;  %p880_p1 = pmov %p879_p11 }
  0x55   : > { %vm202_vm0 = vcmask 261120   ;;  %v201_v0 = vld [vmem:[%s174_s7] sm:$0xff]  ;;  %v217_v7 = vld [vmem:[#allocation5] sm:$0xff]  ;;  %v218_v8 = vld [vmem:[#allocation5 + $0x8] sm:$0xff]  ;;  %v633_v10 = vmov 0.0|0.0   ;;  %vm634_vm1 = vmmov 0  }
  0x56   : > { %608 = vsyncadd (%p880_p1), [#allocation6], 4294966784  ;;  %v203_v1 = vsel %vm202_vm0, %v201_v0, 0.0  ;;  %v219_v9 = vld [vmem:[#allocation5 + $0x10] sm:$0xff]  ;;  %429 = vmatprep.subr.bf16.mxu0 %v633_v10  ;;  %v430_v11 = vpack.c.bf16 %v218_v8, %v217_v7  ;;  %v220_v12 = vld [vmem:[#allocation5 + $0x18] sm:$0xff]  ;;  %v635_v13 = vmov 0.0  }
  0x57   : > { %204 = vadd.xlane.f32.xlu0 %v203_v1  ;;  %426 = vmatprep.mubr.msk.f32.mxu0 %vm634_vm1, %v635_v13  ;;  %v433_v14 = vpack.c.bf16 %v220_v12, %v219_v9  ;;  %v407_v20 = vld [vmem:[%s865_s2] ss:$0 sm:$0xff]  ;;  %s410_s4 = sshll.u32 %s678_s16, 7  ;;  %s200_s25 = scalar_lea.vmem [#allocation7], %s404_s22  ;;  %vm301_vm2 = vcmask 523264  }
  0x58   : > { %431 = vmatpush3.bf16.msra.mxu0 %v430_v11  ;;  %s317_s26 = sshll.u32 %s200_s25, 4  ;;  %s819_s9 = scalar_lea.hbm %s866_s3, %s410_s4  ;;  %s821_s26 = int_to_ptr.vmem [resolvable:$true] %s317_s26 }
  0x59   : > { %432 = vmatprep.subr.bf16.mxu0 %v633_v10  ;;  %s304_s10 = scalar_lea.sflag [#allocation4], %s793_s30  ;;  %s557_s16 = scalar_lea.vmem %s821_s26, 128 }
  0x5a   : > { %p558_p4 = scmp.ne.s32.totalorder %s821_s26, %s557_s16  ;;  %s636_s11 = smov [#allocation7]  }
  0x5b   : > { %s561_s27 = sshll.u32 %s636_s11, 4  ;;  %s562_s27 = int_to_ptr.vmem [resolvable:$false] %s561_s27 }
  0x5c   : > { %434 = vmatpush3.bf16.msra.mxu0 %v433_v14  ;;  %p559_p6 = pnand %p558_p4, %p748_p12  ;;  %s563_s28 = scalar_lea.vmem %s562_s27, 256 }
  0x5d   : > { %p564_p10 = scmp.lt.s32.totalorder %s821_s26, %s562_s27  ;;  %p565_p13 = scmp.lt.s32.totalorder %s563_s28, %s557_s16 }
  0x5e   : > { %p560_p8 = pneg %p559_p6 }
  0x5f   : > { %p566_p3 = por %p565_p13, %p564_p10 }
  0x61   : > { %p567_p7 = pnand %p566_p3, %p560_p8 }
  0xe4   : > { %v205_v2 = vpop.xlane.xlu0 %204 }
  0xe5   : > { %v207_v3 = vmul.f32 0.03125, %v205_v2 }
  0xe7   : > { %v208_v4 = vsub.f32 %v201_v0, %v207_v3 }
  0xe9   : > { %v209_v5 = vmul.f32 %v208_v4, %v208_v4 }
  0xeb   : > { %v210_v6 = vsel %vm202_vm0, %v209_v5, 0.0 }
  0xec   : > { %211 = vadd.xlane.f32.xlu0 %v210_v6 }
 0x179   : > { %v212_v15 = vpop.xlane.xlu0 %211 }
 0x17a   : > { %v213_v16 = vmul.f32 0.03125, %v212_v15 }
 0x17c   : > { %v214_v17 = vadd.f32 1e-05, %v213_v16 }
 0x17e   : > { %497 = vrsqrt.f32 %v214_v17 }
 0x188   : > { %v498_v18 = vpop.eup %497 }
 0x189   : > { %v216_v19 = vmul.f32 %v498_v18, %v208_v4 }
 0x18b   : > { %427 = vmatmul.mubr.msk.f32.vlgmr.msra.gmra.mrb[0].mxu0 %vm202_vm0, %v216_v19 }
 0x25e   : > { %v297_v21 = vpop.f32.mrb[0].mxu0 }
 0x25f   : > { %v298_v22 = vadd.f32 %v407_v20, %v297_v21  ;;  %v428_v23 = vpop.f32.mrb[1].mxu0 }
 0x261   : > { %302 = vst.msk [vmem:[%s200_s25] sm:$0xff] %vm301_vm2, %v298_v22 }
 0x262   : > { %570 = shalt.err (!%p567_p7)
}
 0x263   : > { %s571_s29 = scalar_lea.hbm %s819_s9, 128  ;;  %s575_s22 = scalar_lea.hbm %s866_s3, 256 }
 0x264   : > { %p572_p9 = scmp.ne.s32.totalorder %s819_s9, %s571_s29  ;;  %p576_p0 = scmp.lt.u32.totalorder %s819_s9, %s866_s3 }
 0x265   : > { %p577_p11 = scmp.lt.u32.totalorder %s575_s22, %s571_s29  ;;  %p579_p4 = scmp.lt.u32.totalorder %s571_s29, %s819_s9 }
 0x266   : > { %p573_p2 = pnand %p572_p9, %p748_p12 }
 0x267   : > { %p578_p1 = por %p577_p11, %p576_p0 }
 0x268   : > { %p574_p5 = pneg %p573_p2 }
 0x269   : > { %p580_p6 = por %p579_p4, %p578_p1 }
 0x26b   : > { %p581_p8 = pnand %p580_p6, %p574_p5 }
 0x26d   : > { %584 = shalt.err (!%p581_p8)
}
 0x26e   : > { %441 = dma.vmem_to_hbm [thread:$0]  (%p748_p12), %s821_s26, 128, %s819_s9, %s304_s10  }
 0x26f PF: > { %s329_s18 = sand.u32 1, %s615_s12   ;;  %p881_p10 = scmp.ne.s32.totalorder %s871_s19, 0 }
 0x270   : > { %p882_p13 = scmp.ge.s32.totalorder %s627_s15, 2  ;;  %s330_s20 = scalar_lea.sflag [#allocation4], %s329_s18 }
 0x272   : > { %p452_p3 = pnand %p882_p13, %p881_p10 }
 0x274   : > { %610 = dma.done.wait (!%p452_p3), %s330_s20, 128  }
 0x275   : > { %612 = vsyncadd (!%p452_p3), %s330_s20, 4294967168  ;;  %p17_p7 = scmp.ge.s32.totalorder %s713_s24, 4   ;;  %s883_s12 = smov %s619_s13 }
 0x276   : > { %s884_s13 = smov %s623_s14  ;;  %s885_s14 = smov %s744_s17 }
 0x277   : > { %s886_s15 = smov %s713_s24  ;;  %19 = sbr.rel (!%p17_p7) target bundleno = 6 (0x6), region = 81 }
 0x27e   :  { %335 = vsyncpa [#allocation3], 1 }
 0x27f   :  { %337 = vsyncpa [#allocation3 + $0x1], 1 }
 0x280   :  { %338 = vsyncpa [#allocation6], 1 }
 0x281   :  { %339 = vsyncpa [#allocation4], 1 }
 0x282   :  { %341 = vsyncpa [#allocation4 + $0x1], 1 }

</bundles_post_ra>
